<compile_context>
chip_gen: v6e
topology: v6e:2x2x1
jax: 0.10.0
libtpu: 0.0.40
codegen_flags: <defaults>
</compile_context>

<pallas_src>
import jax
import jax.numpy as jnp
from jax.experimental import pallas as pl
from jax.experimental.pallas import tpu as pltpu


def ranknet_kernel(ids_ref, upT_ref, mpT_ref, w2_ref, out_ref):
    """One batch tile.

    ids_ref : (3, tb) int32   -- rows: [user_ids, movie_ids_1, movie_ids_2]
    upT_ref : (H, n_users)    -- (Emb_u @ W1_u + b1)^T, compute dtype
    mpT_ref : (H, n_movies)   -- (Emb_m @ W1_m)^T,      compute dtype
    w2_ref  : (1, H) f32
    out_ref : (1, tb) f32     -- lane-dense score-difference row
    """
    tb = ids_ref.shape[1]
    n_users = upT_ref.shape[1]
    n_movies = mpT_ref.shape[1]
    cdt = upT_ref.dtype

    ids = ids_ref[...]                       # (3, tb), single load
    uid = ids[0:1, :]                        # (1, tb)
    mid1 = ids[1:2, :]
    mid2 = ids[2:3, :]

    # ---- fused embedding gather + fc1, transposed (batch on lanes) ----
    # one-hot masks are (n_*, tb); compare against a sublane iota, broadcast ids row.
    u_iota = jax.lax.broadcasted_iota(jnp.int32, (n_users, tb), 0)
    m_iota = jax.lax.broadcasted_iota(jnp.int32, (n_movies, tb), 0)

    u_oh = (u_iota == uid).astype(cdt)                                    # (n_users, tb)
    hub = jnp.dot(upT_ref[...], u_oh,
                  preferred_element_type=jnp.float32)                     # (H, tb), b1 folded

    oh1 = (m_iota == mid1).astype(cdt)                                    # (n_movies, tb)
    hm1 = jnp.dot(mpT_ref[...], oh1, preferred_element_type=jnp.float32)  # (H, tb)
    h1 = jnp.maximum(hub + hm1, 0.0)

    oh2 = (m_iota == mid2).astype(cdt)
    hm2 = jnp.dot(mpT_ref[...], oh2, preferred_element_type=jnp.float32)
    h2 = jnp.maximum(hub + hm2, 0.0)

    # ---- fc2 fused with the subtraction: s1 - s2 == w2 @ (h1 - h2); b2 cancels ----
    out_ref[...] = jnp.dot(w2_ref[...], h1 - h2,
                           preferred_element_type=jnp.float32)            # (1, tb)


def ranknet_forward(params, user_ids, movie_ids_1, movie_ids_2, *,
                    tb=None, compute_dtype=jnp.bfloat16):
    """Fully fused forward: gathers + MLP + score diff in one pallas_call."""
    user_emb = params["user_embedding"].astype(jnp.float32)   # (n_users, E)
    movie_emb = params["movie_embedding"].astype(jnp.float32)  # (n_movies, E)
    w1_u = params["w1_u"].astype(jnp.float32)                  # (E, H)
    w1_m = params["w1_m"].astype(jnp.float32)                  # (E, H)
    b1 = params["b1"].astype(jnp.float32)                      # (1, H)
    w2_row = params["w2"].reshape(1, -1).astype(jnp.float32)   # (1, H) (b2 cancels)

    B = user_ids.shape[0]
    n_users = user_emb.shape[0]
    n_movies = movie_emb.shape[0]
    H = w1_u.shape[1]

    # ---- pre-project the embedding tables through fc1 (tiny one-time matmuls) ----
    hp = jax.lax.Precision.HIGHEST
    up_t = (jnp.dot(user_emb, w1_u, precision=hp) + b1).T.astype(compute_dtype)   # (H, n_users)
    mp_t = jnp.dot(movie_emb, w1_m, precision=hp).T.astype(compute_dtype)          # (H, n_movies)

    # ---- tile selection + batch padding (any B works; padded ids = 0 are valid) ----
    if tb is None:
        if B > 2048:
            tb = 1024                        # large batches: big tiles, many steps
        elif B > 256:
            tb = 128 * pl.cdiv(B, 256)       # medium: 2 grid steps (even, for v7x megacore)
        else:
            tb = 128                         # small: a single 128-lane tile
    assert tb % 128 == 0, "tb must be a multiple of 128 (lane-dense output blocks)"
    b_pad = tb * pl.cdiv(B, tb)
    grid = (b_pad // tb,)

    ids = jnp.stack([user_ids, movie_ids_1, movie_ids_2]).astype(jnp.int32)  # (3, B)
    if b_pad != B:
        ids = jnp.pad(ids, ((0, 0), (0, b_pad - B)))   # pad with id 0 (in range)

    full2d = lambda shape: pl.BlockSpec(shape, lambda i: (0, 0))

    out_row = pl.pallas_call(
        ranknet_kernel,
        out_shape=jax.ShapeDtypeStruct((1, b_pad), jnp.float32),
        grid_spec=pltpu.PrefetchScalarGridSpec(
            num_scalar_prefetch=0,
            grid=grid,
            in_specs=[
                pl.BlockSpec((3, tb), lambda i: (0, i)),   # ids (lane-major)
                full2d((H, n_users)),                      # projected user table^T
                full2d((H, n_movies)),                     # projected movie table^T
                full2d((1, H)),                            # w2 row (f32)
            ],
            out_specs=pl.BlockSpec((1, tb), lambda i: (0, i)),
        ),
        compiler_params=pltpu.CompilerParams(
            dimension_semantics=("parallel",),
            vmem_limit_bytes=32 * 1024 * 1024),
    )(ids, up_t, mp_t, w2_row)

    return out_row[:, :B].reshape(B, 1)


def init_params(key, n_users, n_movies, embedding_dim, hidden_dim):
    ks = jax.random.split(key, 6)
    E, H = embedding_dim, hidden_dim
    user_embedding = jax.random.normal(ks[0], (n_users, E), jnp.float32)
    movie_embedding = jax.random.normal(ks[1], (n_movies, E), jnp.float32)
    # fc1: torch weight (H, 2E) -> stored here as (2E, H), split into halves.
    w1 = jax.random.normal(ks[2], (2 * E, H), jnp.float32) * (1.0 / jnp.sqrt(2.0 * E))
    b1 = jax.random.normal(ks[3], (1, H), jnp.float32) * 0.01
    # fc2: torch weight (1, H) -> stored here as (H, 1).
    w2 = jax.random.normal(ks[4], (H, 1), jnp.float32) * (1.0 / jnp.sqrt(H))
    b2 = jax.random.normal(ks[5], (1, 1), jnp.float32) * 0.01
    return {
        "user_embedding": user_embedding,
        "movie_embedding": movie_embedding,
        "w1_u": w1[:E, :],
        "w1_m": w1[E:, :],
        "b1": b1,
        "w2": w2,
        "b2": b2,
    }


def ranknet_reference(params, user_ids, movie_ids_1, movie_ids_2):
    """Pure-JAX reference mirroring the torch forward exactly (incl. b2)."""
    ue = jnp.take(params["user_embedding"], user_ids, axis=0)
    m1 = jnp.take(params["movie_embedding"], movie_ids_1, axis=0)
    m2 = jnp.take(params["movie_embedding"], movie_ids_2, axis=0)
    w1 = jnp.concatenate([params["w1_u"], params["w1_m"]], axis=0)
    hp = jax.lax.Precision.HIGHEST

    def score(x):
        h = jnp.maximum(jnp.dot(x, w1, precision=hp) + params["b1"], 0.0)
        return jnp.dot(h, params["w2"], precision=hp) + params["b2"]

    x1 = jnp.concatenate([ue, m1], axis=1)
    x2 = jnp.concatenate([ue, m2], axis=1)
    return score(x1) - score(x2)


if __name__ == "__main__":
    key = jax.random.PRNGKey(0)

    n_users, n_movies = 32, 64
    embedding_dim, hidden_dim = 16, 32
    batch = 8

    pkey, ikey = jax.random.split(key)
    params = init_params(pkey, n_users, n_movies, embedding_dim, hidden_dim)

    k1, k2, k3 = jax.random.split(ikey, 3)
    user_ids = jax.random.randint(k1, (batch,), 0, n_users)
    movie_ids_1 = jax.random.randint(k2, (batch,), 0, n_movies)
    movie_ids_2 = jax.random.randint(k3, (batch,), 0, n_movies)

    ref = ranknet_reference(params, user_ids, movie_ids_1, movie_ids_2)

    # Default bf16-MXU path (f32 accumulation); bf16 table rounding ~1e-2 abs.
    out = ranknet_forward(params, user_ids, movie_ids_1, movie_ids_2)
    out = jax.block_until_ready(out)
    assert out.shape == (batch, 1) and out.dtype == jnp.float32
    assert jnp.allclose(out, ref, atol=5e-2, rtol=5e-2), (out, ref)

    # Full-f32 path for strict numerics.
    out_f32 = ranknet_forward(params, user_ids, movie_ids_1, movie_ids_2,
                              compute_dtype=jnp.float32)
    out_f32 = jax.block_until_ready(out_f32)
    assert jnp.allclose(out_f32, ref, atol=1e-3, rtol=1e-3), (out_f32, ref)

    print("KERNEL_OK")
</pallas_src>

<mosaic_0001>
module attributes {stable_mosaic.version = 11 : i64} {
  func.func @ranknet_kernel(%arg0: i32, %arg1: memref<3x128xi32, #tpu.memory_space<vmem>>, %arg2: memref<32x32xbf16, #tpu.memory_space<vmem>>, %arg3: memref<32x64xbf16, #tpu.memory_space<vmem>>, %arg4: memref<1x32xf32, #tpu.memory_space<vmem>>, %arg5: memref<1x128xf32, #tpu.memory_space<vmem>>) attributes {dimension_semantics = [#tpu.dimension_semantics<parallel>], iteration_bounds = array<i64: 1>, scalar_prefetch = 0 : i64, scratch_operands = 0 : i64, tpu.core_type = #tpu.core_type<tc>, window_params = [{transform_indices = @transform_0, window_bounds = array<i64: 3, 128>}, {pipeline_mode = #tpu.pipeline_mode<synchronous>, transform_indices = @transform_1, window_bounds = array<i64: 32, 32>}, {pipeline_mode = #tpu.pipeline_mode<synchronous>, transform_indices = @transform_2, window_bounds = array<i64: 32, 64>}, {pipeline_mode = #tpu.pipeline_mode<synchronous>, transform_indices = @transform_3, window_bounds = array<i64: 1, 32>}, {transform_indices = @transform_4, window_bounds = array<i64: 1, 128>}]} {
    %c0 = arith.constant 0 : index
    %c0_0 = arith.constant 0 : index
    %0 = vector.load %arg1[%c0, %c0_0] : memref<3x128xi32, #tpu.memory_space<vmem>>, vector<3x128xi32>
    %1 = vector.extract_strided_slice %0 {offsets = [0, 0], sizes = [1, 128], strides = [1, 1]} : vector<3x128xi32> to vector<1x128xi32>
    %2 = vector.extract_strided_slice %0 {offsets = [1, 0], sizes = [1, 128], strides = [1, 1]} : vector<3x128xi32> to vector<1x128xi32>
    %3 = vector.extract_strided_slice %0 {offsets = [2, 0], sizes = [1, 128], strides = [1, 1]} : vector<3x128xi32> to vector<1x128xi32>
    %4 = tpu.iota {dimensions = array<i32: 0>} : vector<32x128xi32>
    %5 = tpu.iota {dimensions = array<i32: 0>} : vector<64x128xi32>
    %6 = vector.broadcast %1 : vector<1x128xi32> to vector<32x128xi32>
    %7 = arith.cmpi eq, %4, %6 : vector<32x128xi32>
    %8 = arith.extui %7 : vector<32x128xi1> to vector<32x128xi32>
    %9 = arith.sitofp %8 : vector<32x128xi32> to vector<32x128xf32>
    %10 = arith.truncf %9 : vector<32x128xf32> to vector<32x128xbf16>
    %c0_1 = arith.constant 0 : index
    %c0_2 = arith.constant 0 : index
    %11 = vector.load %arg2[%c0_1, %c0_2] : memref<32x32xbf16, #tpu.memory_space<vmem>>, vector<32x32xbf16>
    %cst = arith.constant dense<0.000000e+00> : vector<32x128xf32>
    %12 = tpu.matmul %11, %10, %cst {dimension_numbers = #tpu.dot_dimension_numbers<[1], [0], [0], [1], [0, 0, 1, 1], [], []>} : vector<32x32xbf16>, vector<32x128xbf16>, vector<32x128xf32> -> vector<32x128xf32>
    %13 = vector.broadcast %2 : vector<1x128xi32> to vector<64x128xi32>
    %14 = arith.cmpi eq, %5, %13 : vector<64x128xi32>
    %15 = arith.extui %14 : vector<64x128xi1> to vector<64x128xi32>
    %16 = arith.sitofp %15 : vector<64x128xi32> to vector<64x128xf32>
    %17 = arith.truncf %16 : vector<64x128xf32> to vector<64x128xbf16>
    %c0_3 = arith.constant 0 : index
    %c0_4 = arith.constant 0 : index
    %18 = vector.load %arg3[%c0_3, %c0_4] : memref<32x64xbf16, #tpu.memory_space<vmem>>, vector<32x64xbf16>
    %cst_5 = arith.constant dense<0.000000e+00> : vector<32x128xf32>
    %19 = tpu.matmul %18, %17, %cst_5 {dimension_numbers = #tpu.dot_dimension_numbers<[1], [0], [0], [1], [0, 0, 1, 1], [], []>} : vector<32x64xbf16>, vector<64x128xbf16>, vector<32x128xf32> -> vector<32x128xf32>
    %20 = arith.addf %12, %19 : vector<32x128xf32>
    %cst_6 = arith.constant 0.000000e+00 : f32
    %21 = vector.broadcast %cst_6 : f32 to vector<32x128xf32>
    %22 = arith.maximumf %20, %21 : vector<32x128xf32>
    %23 = vector.broadcast %3 : vector<1x128xi32> to vector<64x128xi32>
    %24 = arith.cmpi eq, %5, %23 : vector<64x128xi32>
    %25 = arith.extui %24 : vector<64x128xi1> to vector<64x128xi32>
    %26 = arith.sitofp %25 : vector<64x128xi32> to vector<64x128xf32>
    %27 = arith.truncf %26 : vector<64x128xf32> to vector<64x128xbf16>
    %c0_7 = arith.constant 0 : index
    %c0_8 = arith.constant 0 : index
    %28 = vector.load %arg3[%c0_7, %c0_8] : memref<32x64xbf16, #tpu.memory_space<vmem>>, vector<32x64xbf16>
    %cst_9 = arith.constant dense<0.000000e+00> : vector<32x128xf32>
    %29 = tpu.matmul %28, %27, %cst_9 {dimension_numbers = #tpu.dot_dimension_numbers<[1], [0], [0], [1], [0, 0, 1, 1], [], []>} : vector<32x64xbf16>, vector<64x128xbf16>, vector<32x128xf32> -> vector<32x128xf32>
    %30 = arith.addf %12, %29 : vector<32x128xf32>
    %cst_10 = arith.constant 0.000000e+00 : f32
    %31 = vector.broadcast %cst_10 : f32 to vector<32x128xf32>
    %32 = arith.maximumf %30, %31 : vector<32x128xf32>
    %c0_11 = arith.constant 0 : index
    %c0_12 = arith.constant 0 : index
    %33 = vector.load %arg4[%c0_11, %c0_12] : memref<1x32xf32, #tpu.memory_space<vmem>>, vector<1x32xf32>
    %34 = arith.subf %22, %32 : vector<32x128xf32>
    %cst_13 = arith.constant dense<0.000000e+00> : vector<1x128xf32>
    %35 = tpu.matmul %33, %34, %cst_13 {dimension_numbers = #tpu.dot_dimension_numbers<[1], [0], [0], [1], [0, 0, 1, 1], [], []>} : vector<1x32xf32>, vector<32x128xf32>, vector<1x128xf32> -> vector<1x128xf32>
    %c0_14 = arith.constant 0 : index
    %c0_15 = arith.constant 0 : index
    %36 = vector.load %arg5[%c0_14, %c0_15] : memref<1x128xf32, #tpu.memory_space<vmem>>, vector<1x128xf32>
    tpu.vector_store %arg5[%c0_14, %c0_15], %35 {strides = array<i32>} : memref<1x128xf32, #tpu.memory_space<vmem>>, vector<1x128xf32>,
    return
  }
  func.func @transform_0(%arg0: i32) -> (i32, i32) {
    %c0_i32 = arith.constant 0 : i32
    %c0_i32_0 = arith.constant 0 : i32
    return %c0_i32, %arg0 : i32, i32
  }
  func.func @transform_1(%arg0: i32) -> (i32, i32) {
    %c0_i32 = arith.constant 0 : i32
    %c0_i32_0 = arith.constant 0 : i32
    %c0_i32_1 = arith.constant 0 : i32
    return %c0_i32, %c0_i32_0 : i32, i32
  }
  func.func @transform_2(%arg0: i32) -> (i32, i32) {
    %c0_i32 = arith.constant 0 : i32
    %c0_i32_0 = arith.constant 0 : i32
    %c0_i32_1 = arith.constant 0 : i32
    return %c0_i32, %c0_i32_0 : i32, i32
  }
  func.func @transform_3(%arg0: i32) -> (i32, i32) {
    %c0_i32 = arith.constant 0 : i32
    %c0_i32_0 = arith.constant 0 : i32
    %c0_i32_1 = arith.constant 0 : i32
    return %c0_i32, %c0_i32_0 : i32, i32
  }
  func.func @transform_4(%arg0: i32) -> (i32, i32) {
    %c0_i32 = arith.constant 0 : i32
    %c0_i32_0 = arith.constant 0 : i32
    return %c0_i32, %arg0 : i32, i32
  }
}

</mosaic_0001>

<bundles_post_ra>
// kernel: tpu_custom_call.1
= control target key start
LH: loop header
LB: loop body
LE: loop exit
PB: predicated region body
PF: predicated region fallthrough
CT: control target
= control target key end

     0   :  { %9 = vsyncpa [#allocation3], 0  ;;  %s750_s0 = inlined_call_operand.hbm [shape: s32[3,128], index: 0, kind: input, shape index: {}]   ;;  %s751_s1 = inlined_call_operand.hbm [shape: bf16[32,32], index: 1, kind: input, shape index: {}]   ;;  %s752_s2 = inlined_call_operand.hbm [shape: bf16[32,64], index: 2, kind: input, shape index: {}]   ;;  %s753_s3 = inlined_call_operand.vmem [shape: f32[1,32], index: 3, kind: input, shape index: {}]   ;;  %s754_s4 = inlined_call_operand.hbm [shape: f32[1,128], index: 4, kind: output, shape index: {}]  }
   0x1   :  { %10 = vsyncpa [#allocation6], 0 }
   0x2   :  { %11 = vsyncpa [#allocation4], 0  ;;  %s664_s15 = smov [#allocation5]  }
   0x3   :  { %s27_s16 = sshll.u32 %s664_s15, 4  ;;  %s28_s16 = int_to_ptr.vmem [resolvable:$true] %s27_s16 }
   0x4   :  { %s586_s17 = scalar_lea.vmem %s28_s16, 256  ;;  %p591_p1 = scmp.lt.s32.totalorder %s28_s16, %s28_s16 }
   0x5   :  { %p587_p0 = scmp.ne.s32.totalorder %s28_s16, %s586_s17  ;;  %p592_p2 = scmp.lt.s32.totalorder %s586_s17, %s586_s17 }
   0x7   :  { %p593_p3 = por %p592_p2, %p591_p1 }
   0x9   :  { %p594_p4 = pnand %p593_p3, %p587_p0 }
   0xb   :  { %597 = shalt.err (!%p594_p4)
}
   0xc   :  { %s665_s18 = smov 64   ;;  %s666_s19 = smov 4  }
   0xd   :  { %33 = dma.hbm_to_vmem [thread:$0]  %s751_s1, 256, %s28_s16, [#allocation6], %s665_s18, %s665_s18, %s666_s19  }
   0xe   :  { %s667_s22 = smov [#allocation2]   ;;  %s668_s24 = smov [#allocation7]  }
   0xf   :  { %s18_s23 = sshll.u32 %s667_s22, 4  ;;  %s39_s25 = sshll.u32 %s668_s24, 4  ;;  %s19_s23 = int_to_ptr.vmem [resolvable:$true] %s18_s23  ;;  %s40_s25 = int_to_ptr.vmem [resolvable:$true] %s39_s25 }
  0x10   :  { %s606_s26 = scalar_lea.vmem %s19_s23, 64  ;;  %p611_p6 = scmp.lt.s32.totalorder %s19_s23, %s19_s23 }
  0x11   :  { %p607_p5 = scmp.ne.s32.totalorder %s19_s23, %s606_s26  ;;  %p612_p7 = scmp.lt.s32.totalorder %s606_s26, %s606_s26 }
  0x13   :  { %p613_p8 = por %p612_p7, %p611_p6 }
  0x15   :  { %p614_p9 = pnand %p613_p8, %p607_p5 }
  0x17   :  { %617 = shalt.err (!%p614_p9)
}
  0x18   :  { %21 = dma.hbm_to_vmem [thread:$0]  %s750_s0, 64, %s19_s23, [#allocation3]  }
  0x19   :  { %s626_s29 = scalar_lea.vmem %s40_s25, 256  ;;  %p631_p11 = scmp.lt.s32.totalorder %s40_s25, %s40_s25 }
  0x1a   :  { %p627_p10 = scmp.ne.s32.totalorder %s40_s25, %s626_s29  ;;  %p632_p12 = scmp.lt.s32.totalorder %s626_s29, %s626_s29 }
  0x1c   :  { %p633_p13 = por %p632_p12, %p631_p11 }
  0x1e   :  { %p634_p0 = pnand %p633_p13, %p627_p10 }
  0x20   :  { %637 = shalt.err (!%p634_p0)
}
  0x21   :  { %45 = dma.hbm_to_vmem [thread:$0]  %s752_s2, 256, %s40_s25, [#allocation6], %s665_s18, %s665_s18, %s666_s19  }
  0x22   :  { %658 = dma.done.wait [#allocation3], 64  }
  0x23   :  { %659 = vsyncadd [#allocation3], 4294967232 }
  0x24   :  { %660 = dma.done.wait [#allocation6], 512  }
  0x25   :  { %661 = vsyncadd [#allocation6], 4294966784  ;;  %v59_v0 = vlaneseq  ;;  %vm755_vm0 = vcmask 261120   ;;  %v58_v12 = vld [vmem:[#allocation2] sm:$0x7]  ;;  %v574_v15 = vld [vmem:[#allocation5] sm:$0xff]  }
  0x26   :  { %526 = vmatprep.mubr.msk.bf16.mxu0 %vm755_vm0, %v574_v15  ;;  %v576_v17 = vld [vmem:[#allocation7] sm:$0xff]   ;;  %v669_v18 = vmov 1.0|1.0   ;;  %vm202_vm13 = vcmask 523264   ;;  %v575_v20 = vld [vmem:[#allocation5 + $0x8] sm:$0xff]   ;;  %v577_v21 = vld [vmem:[#allocation7 + $0x8] sm:$0xff]  }
  0x27   :  { %v707_v1 = vshrl.u32 %v59_v0, 7  ;;  %538 = vmatprep.mubr.msk.bf16.mxu1 %vm202_vm13, %v576_v17  ;;  %v670_v22 = vmov 0.0   ;;  %v355_v55 = vld [vmem:[%s753_s3] sm:$0x1]  ;;  %s672_s5 = smov [#allocation8]  }
  0x28   :  { %s440_s6 = sshll.u32 %s672_s5, 4  ;;  %s441_s6 = int_to_ptr.vmem [resolvable:$true] %s440_s6 }
  0x29   :  { %v70_v2 = vsub.s32 0, %v707_v1  ;;  %v158_v3 = vsub.s32 1, %v707_v1  ;;  %v62_v4 = vadd.s32 16, %v707_v1  ;;  %v63_v5 = vadd.s32 24, %v707_v1  ;;  %s638_s7 = scalar_lea.vmem %s441_s6, 16  ;;  %s642_s8 = scalar_lea.vmem %s441_s6, 32 }
  0x2a   :  { %v268_v6 = vsub.s32 2, %v707_v1  ;;  %v66_v7 = vadd.s32 48, %v707_v1  ;;  %v67_v8 = vadd.s32 56, %v707_v1  ;;  %v717_v9 = vadd.s32 8, %v707_v1  ;;  %p639_p1 = scmp.ne.s32.totalorder %s441_s6, %s638_s7  ;;  %p643_p2 = scmp.lt.s32.totalorder %s441_s6, %s441_s6 }
  0x2b   :  { %v64_v10 = vadd.s32 32, %v707_v1  ;;  %v65_v11 = vadd.s32 40, %v707_v1  ;;  %v71_v13 = vrot.slane %v58_v12, %v70_v2  ;;  %v159_v14 = vrot.slane %v58_v12, %v158_v3  ;;  %p644_p3 = scmp.lt.s32.totalorder %s642_s8, %s638_s7 }
  0x2c   :  { %v269_v16 = vrot.slane %v58_v12, %v268_v6 }
  0x2d   :  { %vm74_vm1 = vcmp.eq.s32.totalorder %v62_v4, %v71_v13  ;;  %vm75_vm2 = vcmp.eq.s32.totalorder %v63_v5, %v71_v13  ;;  %vm166_vm3 = vcmp.eq.s32.totalorder %v66_v7, %v159_v14  ;;  %vm167_vm4 = vcmp.eq.s32.totalorder %v67_v8, %v159_v14  ;;  %p645_p4 = por %p644_p3, %p643_p2 }
  0x2e   :  { %vm456_vm5 = vmpackc.low %vm75_vm2, %vm74_vm1  ;;  %vm72_vm6 = vcmp.eq.s32.totalorder %v707_v1, %v71_v13  ;;  %vm73_vm7 = vcmp.eq.s32.totalorder %v717_v9, %v71_v13  ;;  %vm164_vm8 = vcmp.eq.s32.totalorder %v64_v10, %v159_v14  ;;  %vm165_vm9 = vcmp.eq.s32.totalorder %v65_v11, %v159_v14 }
  0x2f   :  { %522 = vmatprep.subr.msk.bf16.mxu0 %vm456_vm5, %v669_v18  ;;  %vm472_vm10 = vmpackc.low %vm167_vm4, %vm166_vm3  ;;  %vm162_vm11 = vcmp.eq.s32.totalorder %v62_v4, %v159_v14  ;;  %vm163_vm12 = vcmp.eq.s32.totalorder %v63_v5, %v159_v14  ;;  %vm276_vm15 = vcmp.eq.s32.totalorder %v66_v7, %v269_v16  ;;  %vm277_vm0 = vcmp.eq.s32.totalorder %v67_v8, %v269_v16  ;;  %p646_p5 = pnand %p645_p4, %p639_p1 }
  0x30   :  { %530 = vmatprep.subr.msk.bf16.mxu1 %vm472_vm10, %v669_v18  ;;  %523 = vmatpush3.bf16.msk.msra.mxu0 %vm456_vm5, %v669_v18  ;;  %vm458_vm14 = vmpackc.low %vm73_vm7, %vm72_vm6  ;;  %vm274_vm4 = vcmp.eq.s32.totalorder %v64_v10, %v269_v16  ;;  %vm275_vm5 = vcmp.eq.s32.totalorder %v65_v11, %v269_v16  ;;  %vm160_vm6 = vcmp.eq.s32.totalorder %v707_v1, %v159_v14 }
  0x31   :  { %531 = vmatpush3.bf16.msk.msra.mxu1 %vm472_vm10, %v669_v18  ;;  %524 = vmatprep.subr.msk.bf16.mxu0 %vm458_vm14, %v669_v18  ;;  %vm474_vm1 = vmpackc.low %vm165_vm9, %vm164_vm8  ;;  %vm161_vm7 = vcmp.eq.s32.totalorder %v717_v9, %v159_v14  ;;  %vm758_vm9 = vcmask 261120  }
  0x32   :  { %532 = vmatprep.subr.msk.bf16.mxu1 %vm474_vm1, %v669_v18  ;;  %vm726_vm2 = vmpackc.low %vm163_vm12, %vm162_vm11  ;;  %vm272_vm11 = vcmp.eq.s32.totalorder %v62_v4, %v269_v16  ;;  %vm273_vm12 = vcmp.eq.s32.totalorder %v63_v5, %v269_v16 }
  0x33   :  { %vm490_vm3 = vmpackc.low %vm277_vm0, %vm276_vm15  ;;  %vm271_vm15 = vcmp.eq.s32.totalorder %v717_v9, %v269_v16 }
  0x34   :  { %525 = vmatpush3.bf16.msk.msra.mxu0 %vm458_vm14, %v669_v18  ;;  %vm492_vm8 = vmpackc.low %vm275_vm5, %vm274_vm4  ;;  %vm270_vm14 = vcmp.eq.s32.totalorder %v707_v1, %v269_v16 }
  0x35   :  { %533 = vmatpush3.bf16.msk.msra.mxu1 %vm474_vm1, %v669_v18  ;;  %542 = vmatprep.subr.msk.bf16.mxu0 %vm490_vm3, %v669_v18  ;;  %vm478_vm10 = vmpackc.low %vm161_vm7, %vm160_vm6 }
  0x36   :  { %534 = vmatprep.subr.msk.bf16.mxu1 %vm726_vm2, %v669_v18  ;;  %vm494_vm0 = vmpackc.low %vm273_vm12, %vm272_vm11 }
  0x37   :  { %527 = vmatmul.mubr.msk.bf16.vlgmr.msra.gmra.mxu0 %vm758_vm9, %v575_v20  ;;  %vm496_vm1 = vmpackc.low %vm271_vm15, %vm270_vm14 }
  0x38   :  { %543 = vmatpush3.bf16.msk.msra.mxu0 %vm490_vm3, %v669_v18  ;;  %550 = vmatprep.mubr.msk.bf16.mxu0 %vm202_vm13, %v576_v17 }
  0x39   :  { %535 = vmatpush3.bf16.msk.msra.mxu1 %vm726_vm2, %v669_v18  ;;  %544 = vmatprep.subr.msk.bf16.mxu0 %vm492_vm8, %v669_v18  ;;  %vm671_vm2 = vmmov 0  }
  0x3a   :  { %536 = vmatprep.subr.msk.bf16.mxu1 %vm478_vm10, %v669_v18 }
  0x3c   :  { %545 = vmatpush3.bf16.msk.msra.mxu0 %vm492_vm8, %v669_v18 }
  0x3d   :  { %537 = vmatpush3.bf16.msk.msra.mxu1 %vm478_vm10, %v669_v18  ;;  %546 = vmatprep.subr.msk.bf16.mxu0 %vm494_vm0, %v669_v18 }
  0x3e   :  { %554 = vmatprep.subr.mxu1 %v670_v22 }
  0x40   :  { %539 = vmatmul.mubr.msk.bf16.vlgmr.msra.gmra.mxu1 %vm202_vm13, %v577_v21  ;;  %547 = vmatpush3.bf16.msk.msra.mxu0 %vm494_vm0, %v669_v18 }
  0x41   :  { %548 = vmatprep.subr.msk.bf16.mxu0 %vm496_vm1, %v669_v18  ;;  %562 = vmatprep.mubr.msk.f32.mxu1 %vm671_vm2, %v670_v22 }
  0x44   :  { %549 = vmatpush3.bf16.msk.msra.mxu0 %vm496_vm1, %v669_v18 }
  0x47   :  { %551 = vmatmul.mubr.msk.bf16.vlgmr.msra.gmra.mxu0 %vm202_vm13, %v577_v21  ;;  %vm759_vm13 = vmmov %vm758_vm9 }
  0xf7   :  { %v528_v23 = vpop.f32.mrf.mxu0 }
  0xf9   :  { %v141_v24 = vpop.f32.mrf.mxu0 }
  0xfb   :  { %v529_v26 = vpop.f32.mrf.mxu0 }
  0xfd   :  { %v144_v28 = vpop.f32.mrf.mxu0 }
 0x100   :  { %v540_v25 = vpop.f32.mrf.mxu1 }
 0x101   :  { %v260_v36 = vadd.f32 %v540_v25, %v528_v23 }
 0x102   :  { %v243_v27 = vpop.f32.mrf.mxu1 }
 0x103   :  { %v264_v45 = vmax.f32 %v260_v36, 0.0  ;;  %v258_v46 = vadd.f32 %v243_v27, %v141_v24 }
 0x104   :  { %v541_v29 = vpop.f32.mrf.mxu1 }
 0x105   :  { %v261_v31 = vadd.f32 %v541_v29, %v529_v26  ;;  %v262_v52 = vmax.f32 %v258_v46, 0.0 }
 0x106   :  { %v246_v33 = vpop.f32.mrf.mxu1 }
 0x107   :  { %v552_v30 = vpop.f32.mrf.mxu0  ;;  %v265_v38 = vmax.f32 %v261_v31, 0.0  ;;  %v259_v39 = vadd.f32 %v246_v33, %v144_v28 }
 0x108   :  { %v349_v34 = vadd.f32 %v552_v30, %v528_v23 }
 0x109   :  { %v332_v32 = vpop.f32.mrf.mxu0  ;;  %v263_v49 = vmax.f32 %v259_v39, 0.0 }
 0x10a   :  { %v353_v41 = vmax.f32 %v349_v34, 0.0  ;;  %v347_v42 = vadd.f32 %v332_v32, %v141_v24 }
 0x10b   :  { %v553_v35 = vpop.f32.mrf.mxu0 }
 0x10c   :  { %v350_v37 = vadd.f32 %v553_v35, %v529_v26  ;;  %v358_v50 = vsub.f32 %v264_v45, %v353_v41  ;;  %v351_v51 = vmax.f32 %v347_v42, 0.0 }
 0x10d   :  { %v335_v40 = vpop.f32.mrf.mxu0 }
 0x10e   :  { %v354_v43 = vmax.f32 %v350_v37, 0.0  ;;  %v348_v44 = vadd.f32 %v335_v40, %v144_v28  ;;  %v356_v54 = vsub.f32 %v262_v52, %v351_v51 }
 0x110   :  { %v359_v47 = vsub.f32 %v265_v38, %v354_v43  ;;  %v352_v48 = vmax.f32 %v348_v44, 0.0 }
 0x112   :  { %555 = vmatpush3.msra.mxu1 %v359_v47  ;;  %v357_v53 = vsub.f32 %v263_v49, %v352_v48 }
 0x113   :  { %556 = vmatprep.subr.mxu1 %v670_v22 }
 0x114   :  { %557 = vmatpush3.msra.mxu1 %v358_v50 }
 0x115   :  { %558 = vmatprep.subr.mxu1 %v670_v22 }
 0x116   :  { %559 = vmatpush3.msra.mxu1 %v357_v53 }
 0x117   :  { %560 = vmatprep.subr.mxu1 %v670_v22 }
 0x118   :  { %561 = vmatpush3.msra.mxu1 %v356_v54 }
 0x119   :  { %563 = vmatmul.mubr.msk.f32.vlgmr.msra.gmra.mxu1 %vm759_vm13, %v355_v55 }
 0x1d9   :  { %v429_v56 = vpop.f32.mrf.mxu1 }
 0x1da   :  { %433 = vst [vmem:[#allocation8] sm:$0x1] %v429_v56 }
 0x1db   :  { %v564_v57 = vpop.f32.mrf.mxu1 }
 0x1dc   :  { %649 = shalt.err (!%p646_p5)
}
 0x1dd   :  { %443 = dma.vmem_to_hbm [thread:$0]  %s441_s6, 16, %s754_s4, [#allocation4]  }
 0x1de   :  { %662 = dma.done.wait [#allocation4], 16  }
 0x1df   :  { %663 = vsyncadd [#allocation4], 4294967280 }
 0x1e0   :  { %447 = vsyncpa [#allocation3], 1 }
 0x1e1   :  { %448 = vsyncpa [#allocation6], 1 }
 0x1e2   :  { %449 = vsyncpa [#allocation4], 1 }

</bundles_post_ra>
